<compile_context>
chip_gen: v6e
topology: v6e:2x2x1
jax: 0.10.0
libtpu: 0.0.40
codegen_flags: <defaults>
</compile_context>

<pallas_src>
import functools

import jax
import jax.numpy as jnp
from jax.experimental import pallas as pl
from jax.experimental.pallas import tpu as pltpu


def _relu6(x):
    return jnp.minimum(jnp.maximum(x, 0.0), 6.0)


def _round_up(n, m):
    return ((n + m - 1) // m) * m


def _vmem_cap_bytes():
    """Generation-aware VMEM cap: physical capacity minus ~25% headroom."""
    try:
        cap = int(getattr(pltpu.get_tpu_info(), "vmem_capacity_bytes", 0))
        if cap <= 0:
            cap = 128 << 20
    except Exception:
        cap = 128 << 20
    return (cap * 3) // 4


def generator_kernel(x_ref, w1_ref, b1_ref, w2_ref, b2_ref, w3_ref, b3_ref,
                     o_ref):
    # Three dependent matmuls + f32 bias/relu6 epilogue on one batch tile.
    # Matmul operands stay in the compute dtype (bf16 by default, full MXU
    # rate on v5e/v6e/v7x); accumulation and elementwise math are f32 (v5e's
    # VPU has no bf16 support, so an f32 epilogue is the right choice there).
    x = x_ref[...]

    h1 = jnp.dot(x, w1_ref[...], preferred_element_type=jnp.float32)
    h1 = _relu6(h1 + b1_ref[...])

    h2 = jnp.dot(h1.astype(w2_ref.dtype), w2_ref[...],
                 preferred_element_type=jnp.float32)
    h2 = _relu6(h2 + b2_ref[...])

    out = jnp.dot(h2.astype(w3_ref.dtype), w3_ref[...],
                  preferred_element_type=jnp.float32)
    out = out + b3_ref[...]

    o_ref[...] = out.astype(o_ref.dtype)


def prepare_generator_params(w1, b1, w2, b2, w3, b3, *,
                             compute_dtype=jnp.bfloat16):
    """Pad + cast parameters ONCE (hoisted out of the per-call forward path).

    Weights are expected pre-transposed as (in, out); biases as (1, out).
    All feature dims are zero-padded to multiples of 128 (lane-dense matmuls
    and unmasked full-width stores). Zero padding is numerically exact:
    relu6(0)=0 and zero rows/cols contribute nothing.
    Biases stay f32 (the epilogue is f32).
    """
    in_dim, hid = w1.shape
    out_dim = w3.shape[1]
    in_p = _round_up(in_dim, 128)
    hid_p = _round_up(hid, 128)
    out_p = _round_up(out_dim, 128)

    def pad2(a, rows, cols, dt):
        a = jnp.asarray(a, dt)
        return jnp.pad(a, ((0, rows - a.shape[0]), (0, cols - a.shape[1])))

    params = (
        pad2(w1, in_p, hid_p, compute_dtype),
        pad2(b1, 1, hid_p, jnp.float32),
        pad2(w2, hid_p, hid_p, compute_dtype),
        pad2(b2, 1, hid_p, jnp.float32),
        pad2(w3, hid_p, out_p, compute_dtype),
        pad2(b3, 1, out_p, jnp.float32),
    )
    return jax.block_until_ready(params)


@functools.partial(jax.jit,
                   static_argnames=("out_dim", "grid_splits", "out_dtype"))
def generator_forward(x, params, *, out_dim, grid_splits=1, out_dtype=None):
    """x: (B, input_size); params: output of prepare_generator_params.

    out_dim:     original (unpadded) output feature count, for the final slice.
    grid_splits: parallel batch tiles (set 2 on v7x to use both TensorCores --
                 only worthwhile when B is large enough that per-TC matmul
                 work exceeds the duplicated resident-weight DMA).
    out_dtype:   output element type (default: x.dtype; pass jnp.bfloat16 to
                 halve output writeback if the consumer tolerates it).
    """
    w1_p, b1_p, w2_p, b2_p, w3_p, b3_p = params
    compute_dtype = w1_p.dtype
    out_dtype = x.dtype if out_dtype is None else out_dtype

    B, in_dim = x.shape
    in_p, hid_p = w1_p.shape
    out_p = w3_p.shape[1]
    assert in_dim <= in_p and out_dim <= out_p, "params/input size mismatch"

    csize = jnp.dtype(compute_dtype).itemsize
    osize = jnp.dtype(out_dtype).itemsize
    sub = 16 if csize < 4 else 8  # bf16 packs 16 rows/vreg, f32 packs 8

    # Megacore split only when each core actually gets a full sublane-aligned
    # tile of work; otherwise silently fall back to a single tile.
    splits = grid_splits if pl.cdiv(B, grid_splits) >= sub else 1
    # Cap the batch tile: ~512 rows amortizes per-step overhead; bigger tiles
    # only inflate VMEM (x tile + two f32 hid_p-wide intermediates + out tile
    # all live at once) and vreg pressure.
    tile_b = min(_round_up(pl.cdiv(B, splits), sub), 512)
    B_p = _round_up(B, tile_b)
    grid = (B_p // tile_b,)

    # Only x is padded per call; params were padded/cast once at init.
    x_p = jnp.pad(x.astype(compute_dtype),
                  ((0, B_p - B), (0, in_p - in_dim)))

    # VMEM budget: single-buffered resident weights/biases + double-buffered
    # activation tiles + headroom, capped by generation-aware physical limit.
    weight_bytes = (in_p * hid_p + hid_p * hid_p + hid_p * out_p) * csize \
        + (2 * hid_p + out_p) * 4
    act_bytes = tile_b * (in_p * csize + out_p * osize + 2 * hid_p * 4)
    vmem_limit = int(min(max(weight_bytes + 2 * act_bytes + (8 << 20),
                             16 << 20),
                         _vmem_cap_bytes()))

    # Advisory cost estimate so XLA can schedule around this latency-bound call.
    flops = 2 * B_p * (in_p * hid_p + hid_p * hid_p + hid_p * out_p)
    bytes_accessed = int(
        x_p.size * csize
        + (w1_p.size + w2_p.size + w3_p.size) * csize
        + (b1_p.size + b2_p.size + b3_p.size) * 4
        + B_p * out_p * osize)
    cost = pl.CostEstimate(flops=int(flops), transcendentals=0,
                           bytes_accessed=bytes_accessed)

    # Grid-invariant weights/biases: same block every step -> single-buffer
    # them (halves their VMEM footprint, removes a useless second DMA buffer).
    def resident(shape):
        return pl.BlockSpec(shape, lambda i: (0, 0),
                            pipeline_mode=pl.Buffered(1))

    out_padded = pl.pallas_call(
        generator_kernel,
        out_shape=jax.ShapeDtypeStruct((B_p, out_p), out_dtype),
        grid_spec=pltpu.PrefetchScalarGridSpec(
            num_scalar_prefetch=0,
            grid=grid,
            in_specs=[
                pl.BlockSpec((tile_b, in_p), lambda i: (i, 0)),  # x tile
                resident((in_p, hid_p)),    # w1
                resident((1, hid_p)),       # b1
                resident((hid_p, hid_p)),   # w2
                resident((1, hid_p)),       # b2
                resident((hid_p, out_p)),   # w3
                resident((1, out_p)),       # b3
            ],
            out_specs=pl.BlockSpec((tile_b, out_p), lambda i: (i, 0)),
        ),
        compiler_params=pltpu.CompilerParams(
            dimension_semantics=("parallel",),
            vmem_limit_bytes=vmem_limit),
        cost_estimate=cost,
    )(x_p, w1_p, b1_p, w2_p, b2_p, w3_p, b3_p)

    # Strip padding (wrapper-side; no in-kernel relayout). If the consumer can
    # work on the padded slab, return out_padded directly instead.
    return out_padded[:B, :out_dim]


def init_linear_params(key, in_features, out_features):
    """Deterministic init mimicking nn.Linear default (+/- 1/sqrt(fan_in)).

    Weight returned pre-transposed to (in_features, out_features); bias (1, out).
    """
    kw, kb = jax.random.split(key)
    bound = 1.0 / jnp.sqrt(jnp.float32(in_features))
    w = jax.random.uniform(kw, (in_features, out_features), jnp.float32,
                           minval=-bound, maxval=bound)
    b = jax.random.uniform(kb, (1, out_features), jnp.float32,
                           minval=-bound, maxval=bound)
    return w, b


def reference_forward(x, w1, b1, w2, b2, w3, b3):
    h = jnp.clip(x @ w1 + b1, 0.0, 6.0)
    h = jnp.clip(h @ w2 + b2, 0.0, 6.0)
    return h @ w3 + b3


if __name__ == "__main__":
    input_size, hidden_size, output_size = 16, 32, 16
    batch = 16

    key = jax.random.PRNGKey(0)
    kx, k1, k2, k3 = jax.random.split(key, 4)

    x = jax.random.normal(kx, (batch, input_size), jnp.float32)
    w1, b1 = init_linear_params(k1, input_size, hidden_size)
    w2, b2 = init_linear_params(k2, hidden_size, hidden_size)
    w3, b3 = init_linear_params(k3, hidden_size, output_size)

    ref = reference_forward(x, w1, b1, w2, b2, w3, b3)

    # Correctness-check path: f32 compute (TPU f32 dot may be multi-pass on
    # the MXU -> slightly loosened tolerance vs. a CPU-exact reference).
    params_f32 = prepare_generator_params(w1, b1, w2, b2, w3, b3,
                                          compute_dtype=jnp.float32)
    out_f32 = jax.block_until_ready(
        generator_forward(x, params_f32, out_dim=output_size))
    assert out_f32.shape == (batch, output_size)
    assert jnp.allclose(out_f32, ref, atol=1e-4, rtol=1e-4), \
        "f32 kernel mismatch vs reference"

    # Production path: bf16 MXU; params were padded/cast once outside the
    # per-call path, so the hot path only pads x and launches the kernel.
    params_bf16 = prepare_generator_params(w1, b1, w2, b2, w3, b3,
                                           compute_dtype=jnp.bfloat16)
    out_bf16 = jax.block_until_ready(
        generator_forward(x, params_bf16, out_dim=output_size))
    assert out_bf16.shape == (batch, output_size)
    assert jnp.allclose(out_bf16, ref, atol=1e-1, rtol=1e-1), \
        "bf16 kernel mismatch vs reference"

    print("KERNEL_OK")
</pallas_src>

<mosaic_0001>
module attributes {stable_mosaic.version = 11 : i64} {
  func.func @generator_kernel(%arg0: i32, %arg1: memref<16x128xf32, #tpu.memory_space<vmem>>, %arg2: memref<128x128xf32, #tpu.memory_space<vmem>>, %arg3: memref<1x128xf32, #tpu.memory_space<vmem>>, %arg4: memref<128x128xf32, #tpu.memory_space<vmem>>, %arg5: memref<1x128xf32, #tpu.memory_space<vmem>>, %arg6: memref<128x128xf32, #tpu.memory_space<vmem>>, %arg7: memref<1x128xf32, #tpu.memory_space<vmem>>, %arg8: memref<16x128xf32, #tpu.memory_space<vmem>>) attributes {dimension_semantics = [#tpu.dimension_semantics<parallel>], iteration_bounds = array<i64: 1>, scalar_prefetch = 0 : i64, scratch_operands = 0 : i64, tpu.core_type = #tpu.core_type<tc>, window_params = [{transform_indices = @transform_0, window_bounds = array<i64: 16, 128>}, {pipeline_mode = #tpu.pipeline_mode<synchronous>, transform_indices = @transform_1, window_bounds = array<i64: 128, 128>}, {pipeline_mode = #tpu.pipeline_mode<synchronous>, transform_indices = @transform_2, window_bounds = array<i64: 1, 128>}, {pipeline_mode = #tpu.pipeline_mode<synchronous>, transform_indices = @transform_3, window_bounds = array<i64: 128, 128>}, {pipeline_mode = #tpu.pipeline_mode<synchronous>, transform_indices = @transform_4, window_bounds = array<i64: 1, 128>}, {pipeline_mode = #tpu.pipeline_mode<synchronous>, transform_indices = @transform_5, window_bounds = array<i64: 128, 128>}, {pipeline_mode = #tpu.pipeline_mode<synchronous>, transform_indices = @transform_6, window_bounds = array<i64: 1, 128>}, {transform_indices = @transform_7, window_bounds = array<i64: 16, 128>}]} {
    %c0 = arith.constant 0 : index
    %c0_0 = arith.constant 0 : index
    %0 = vector.load %arg1[%c0, %c0_0] : memref<16x128xf32, #tpu.memory_space<vmem>>, vector<16x128xf32>
    %c0_1 = arith.constant 0 : index
    %c0_2 = arith.constant 0 : index
    %1 = vector.load %arg2[%c0_1, %c0_2] : memref<128x128xf32, #tpu.memory_space<vmem>>, vector<128x128xf32>
    %cst = arith.constant dense<0.000000e+00> : vector<16x128xf32>
    %2 = tpu.matmul %0, %1, %cst {dimension_numbers = #tpu.dot_dimension_numbers<[1], [0], [0], [1], [0, 0, 1, 1], [], []>} : vector<16x128xf32>, vector<128x128xf32>, vector<16x128xf32> -> vector<16x128xf32>
    %c0_3 = arith.constant 0 : index
    %c0_4 = arith.constant 0 : index
    %3 = vector.load %arg3[%c0_3, %c0_4] : memref<1x128xf32, #tpu.memory_space<vmem>>, vector<1x128xf32>
    %4 = vector.broadcast %3 : vector<1x128xf32> to vector<16x128xf32>
    %5 = arith.addf %2, %4 : vector<16x128xf32>
    %cst_5 = arith.constant 0.000000e+00 : f32
    %6 = vector.broadcast %cst_5 : f32 to vector<16x128xf32>
    %7 = arith.maximumf %5, %6 : vector<16x128xf32>
    %cst_6 = arith.constant 6.000000e+00 : f32
    %8 = vector.broadcast %cst_6 : f32 to vector<16x128xf32>
    %9 = arith.minimumf %7, %8 : vector<16x128xf32>
    %c0_7 = arith.constant 0 : index
    %c0_8 = arith.constant 0 : index
    %10 = vector.load %arg4[%c0_7, %c0_8] : memref<128x128xf32, #tpu.memory_space<vmem>>, vector<128x128xf32>
    %cst_9 = arith.constant dense<0.000000e+00> : vector<16x128xf32>
    %11 = tpu.matmul %9, %10, %cst_9 {dimension_numbers = #tpu.dot_dimension_numbers<[1], [0], [0], [1], [0, 0, 1, 1], [], []>} : vector<16x128xf32>, vector<128x128xf32>, vector<16x128xf32> -> vector<16x128xf32>
    %c0_10 = arith.constant 0 : index
    %c0_11 = arith.constant 0 : index
    %12 = vector.load %arg5[%c0_10, %c0_11] : memref<1x128xf32, #tpu.memory_space<vmem>>, vector<1x128xf32>
    %13 = vector.broadcast %12 : vector<1x128xf32> to vector<16x128xf32>
    %14 = arith.addf %11, %13 : vector<16x128xf32>
    %cst_12 = arith.constant 0.000000e+00 : f32
    %15 = vector.broadcast %cst_12 : f32 to vector<16x128xf32>
    %16 = arith.maximumf %14, %15 : vector<16x128xf32>
    %cst_13 = arith.constant 6.000000e+00 : f32
    %17 = vector.broadcast %cst_13 : f32 to vector<16x128xf32>
    %18 = arith.minimumf %16, %17 : vector<16x128xf32>
    %c0_14 = arith.constant 0 : index
    %c0_15 = arith.constant 0 : index
    %19 = vector.load %arg6[%c0_14, %c0_15] : memref<128x128xf32, #tpu.memory_space<vmem>>, vector<128x128xf32>
    %cst_16 = arith.constant dense<0.000000e+00> : vector<16x128xf32>
    %20 = tpu.matmul %18, %19, %cst_16 {dimension_numbers = #tpu.dot_dimension_numbers<[1], [0], [0], [1], [0, 0, 1, 1], [], []>} : vector<16x128xf32>, vector<128x128xf32>, vector<16x128xf32> -> vector<16x128xf32>
    %c0_17 = arith.constant 0 : index
    %c0_18 = arith.constant 0 : index
    %21 = vector.load %arg7[%c0_17, %c0_18] : memref<1x128xf32, #tpu.memory_space<vmem>>, vector<1x128xf32>
    %22 = vector.broadcast %21 : vector<1x128xf32> to vector<16x128xf32>
    %23 = arith.addf %20, %22 : vector<16x128xf32>
    %c0_19 = arith.constant 0 : index
    %c0_20 = arith.constant 0 : index
    %24 = vector.load %arg8[%c0_19, %c0_20] : memref<16x128xf32, #tpu.memory_space<vmem>>, vector<16x128xf32>
    tpu.vector_store %arg8[%c0_19, %c0_20], %23 {strides = array<i32>} : memref<16x128xf32, #tpu.memory_space<vmem>>, vector<16x128xf32>,
    return
  }
  func.func @transform_0(%arg0: i32) -> (i32, i32) {
    %c0_i32 = arith.constant 0 : i32
    %c0_i32_0 = arith.constant 0 : i32
    return %arg0, %c0_i32 : i32, i32
  }
  func.func @transform_1(%arg0: i32) -> (i32, i32) {
    %c0_i32 = arith.constant 0 : i32
    %c0_i32_0 = arith.constant 0 : i32
    %c0_i32_1 = arith.constant 0 : i32
    return %c0_i32, %c0_i32_0 : i32, i32
  }
  func.func @transform_2(%arg0: i32) -> (i32, i32) {
    %c0_i32 = arith.constant 0 : i32
    %c0_i32_0 = arith.constant 0 : i32
    %c0_i32_1 = arith.constant 0 : i32
    return %c0_i32, %c0_i32_0 : i32, i32
  }
  func.func @transform_3(%arg0: i32) -> (i32, i32) {
    %c0_i32 = arith.constant 0 : i32
    %c0_i32_0 = arith.constant 0 : i32
    %c0_i32_1 = arith.constant 0 : i32
    return %c0_i32, %c0_i32_0 : i32, i32
  }
  func.func @transform_4(%arg0: i32) -> (i32, i32) {
    %c0_i32 = arith.constant 0 : i32
    %c0_i32_0 = arith.constant 0 : i32
    %c0_i32_1 = arith.constant 0 : i32
    return %c0_i32, %c0_i32_0 : i32, i32
  }
  func.func @transform_5(%arg0: i32) -> (i32, i32) {
    %c0_i32 = arith.constant 0 : i32
    %c0_i32_0 = arith.constant 0 : i32
    %c0_i32_1 = arith.constant 0 : i32
    return %c0_i32, %c0_i32_0 : i32, i32
  }
  func.func @transform_6(%arg0: i32) -> (i32, i32) {
    %c0_i32 = arith.constant 0 : i32
    %c0_i32_0 = arith.constant 0 : i32
    %c0_i32_1 = arith.constant 0 : i32
    return %c0_i32, %c0_i32_0 : i32, i32
  }
  func.func @transform_7(%arg0: i32) -> (i32, i32) {
    %c0_i32 = arith.constant 0 : i32
    %c0_i32_0 = arith.constant 0 : i32
    return %arg0, %c0_i32 : i32, i32
  }
}

</mosaic_0001>

<bundles_post_ra>
// kernel: generator_forward.1
= control target key start
LH: loop header
LB: loop body
LE: loop exit
PB: predicated region body
PF: predicated region fallthrough
CT: control target
= control target key end

     0   :  { %12 = vsyncpa [#allocation3], 0  ;;  %s731_s0 = inlined_call_operand.vmem [shape: f32[16,128], index: 0, kind: input, shape index: {}]   ;;  %s732_s1 = inlined_call_operand.hbm [shape: f32[128,128], index: 1, kind: input, shape index: {}]   ;;  %s733_s2 = inlined_call_operand.vmem [shape: f32[1,128], index: 2, kind: input, shape index: {}]   ;;  %s734_s3 = inlined_call_operand.hbm [shape: f32[128,128], index: 3, kind: input, shape index: {}]   ;;  %s735_s4 = inlined_call_operand.vmem [shape: f32[1,128], index: 4, kind: input, shape index: {}]   ;;  %s736_s5 = inlined_call_operand.hbm [shape: f32[128,128], index: 5, kind: input, shape index: {}]   ;;  %s737_s6 = inlined_call_operand.vmem [shape: f32[1,128], index: 6, kind: input, shape index: {}]   ;;  %s738_s7 = inlined_call_operand.hbm [shape: f32[16,128], index: 7, kind: output, shape index: {}]  }
   0x1   :  { %13 = vsyncpa [#allocation6], 0 }
   0x2   :  { %14 = vsyncpa [#allocation4], 0  ;;  %s646_s24 = smov [#allocation5]   ;;  %s647_s26 = smov [#allocation2]  }
   0x3   :  { %s36_s25 = sshll.u32 %s646_s24, 4  ;;  %s22_s27 = sshll.u32 %s647_s26, 4  ;;  %s37_s25 = int_to_ptr.vmem [resolvable:$true] %s36_s25  ;;  %s23_s27 = int_to_ptr.vmem [resolvable:$true] %s22_s27 }
   0x4   :  { %s568_s28 = scalar_lea.vmem %s37_s25, 2048  ;;  %p573_p1 = scmp.lt.s32.totalorder %s37_s25, %s37_s25 }
   0x5   :  { %p569_p0 = scmp.ne.s32.totalorder %s37_s25, %s568_s28  ;;  %p574_p2 = scmp.lt.s32.totalorder %s568_s28, %s568_s28 }
   0x7   :  { %p575_p3 = por %p574_p2, %p573_p1 }
   0x9   :  { %p576_p4 = pnand %p575_p3, %p569_p0 }
   0xb   :  { %579 = shalt.err (!%p576_p4)
}
   0xc   :  { %s648_s29 = smov 128   ;;  %s649_s30 = smov 8  }
   0xd   :  { %42 = dma.hbm_to_vmem [thread:$0]  %s734_s3, 2048, %s37_s25, [#allocation6], %s648_s29, %s648_s29, %s649_s30  }
   0xe   :  { %s588_s10 = scalar_lea.vmem %s23_s27, 2048  ;;  %p593_p6 = scmp.lt.s32.totalorder %s23_s27, %s23_s27 }
   0xf   :  { %p589_p5 = scmp.ne.s32.totalorder %s23_s27, %s588_s10  ;;  %p594_p7 = scmp.lt.s32.totalorder %s588_s10, %s588_s10 }
  0x11   :  { %p595_p8 = por %p594_p7, %p593_p6 }
  0x13   :  { %p596_p9 = pnand %p595_p8, %p589_p5 }
  0x15   :  { %599 = shalt.err (!%p596_p9)
}
  0x16   :  { %28 = dma.hbm_to_vmem [thread:$0]  %s732_s1, 2048, %s23_s27, [#allocation3], %s648_s29, %s648_s29, %s649_s30  }
  0x17   :  { %s650_s13 = smov [#allocation7]  }
  0x18   :  { %s50_s14 = sshll.u32 %s650_s13, 4  ;;  %s51_s14 = int_to_ptr.vmem [resolvable:$true] %s50_s14 }
  0x19   :  { %s608_s15 = scalar_lea.vmem %s51_s14, 2048  ;;  %p613_p11 = scmp.lt.s32.totalorder %s51_s14, %s51_s14 }
  0x1a   :  { %p609_p10 = scmp.ne.s32.totalorder %s51_s14, %s608_s15  ;;  %p614_p12 = scmp.lt.s32.totalorder %s608_s15, %s608_s15 }
  0x1c   :  { %p615_p13 = por %p614_p12, %p613_p11 }
  0x1e   :  { %p616_p0 = pnand %p615_p13, %p609_p10 }
  0x20   :  { %619 = shalt.err (!%p616_p0)
}
  0x21   :  { %56 = dma.hbm_to_vmem [thread:$0]  %s736_s5, 2048, %s51_s14, [#allocation6], %s648_s29, %s648_s29, %s649_s30  }
  0x22   :  { %640 = dma.done.wait [#allocation3], 2048  }
  0x23   :  { %641 = vsyncadd [#allocation3], 4294965248 }
  0x24   :  { %642 = dma.done.wait [#allocation6], 4096  }
  0x25   :  { %643 = vsyncadd [#allocation6], 4294963200  ;;  %v85_v0 = vld [vmem:[#allocation2 + $0x78] sm:$0xff]  ;;  %v84_v1 = vld [vmem:[#allocation2 + $0x70] sm:$0xff]  ;;  %s651_s23 = smov [#allocation8]  }
  0x26   :  { %449 = vmatprep.subr.mxu0 %v85_v0  ;;  %v83_v2 = vld [vmem:[#allocation2 + $0x68] sm:$0xff]  ;;  %v82_v3 = vld [vmem:[#allocation2 + $0x60] sm:$0xff]  ;;  %v81_v5 = vld [vmem:[#allocation2 + $0x58] sm:$0xff]  ;;  %s379_s24 = sshll.u32 %s651_s23, 4  ;;  %s380_s24 = int_to_ptr.vmem [resolvable:$true] %s379_s24 }
  0x27   :  { %450 = vmatpush3.msra.mxu0 %v85_v0  ;;  %v68_v4 = vld [vmem:[%s731_s0] sm:$0xff]  ;;  %v187_v6 = vld [vmem:[#allocation5 + $0x78] sm:$0xff]  ;;  %v186_v7 = vld [vmem:[#allocation5 + $0x70] sm:$0xff]  ;;  %p625_p2 = scmp.lt.s32.totalorder %s380_s24, %s380_s24 }
  0x28   :  { %451 = vmatprep.subr.mxu0 %v84_v1  ;;  %481 = vmatprep.mubr.f32.mxu0 %v68_v4  ;;  %v80_v8 = vld [vmem:[#allocation2 + $0x50] sm:$0xff]  ;;  %v185_v9 = vld [vmem:[#allocation5 + $0x68] sm:$0xff]  ;;  %v184_v11 = vld [vmem:[#allocation5 + $0x60] sm:$0xff] }
  0x29   :  { %452 = vmatpush3.msra.mxu0 %v84_v1  ;;  %484 = vmatprep.subr.mxu1 %v187_v6  ;;  %v79_v10 = vld [vmem:[#allocation2 + $0x48] sm:$0xff]  ;;  %v78_v12 = vld [vmem:[#allocation2 + $0x40] sm:$0xff]  ;;  %v183_v13 = vld [vmem:[#allocation5 + $0x58] sm:$0xff] }
  0x2a   :  { %453 = vmatprep.subr.mxu0 %v83_v2  ;;  %485 = vmatpush3.msra.mxu1 %v187_v6  ;;  %v77_v14 = vld [vmem:[#allocation2 + $0x38] sm:$0xff]  ;;  %v182_v15 = vld [vmem:[#allocation5 + $0x50] sm:$0xff]  ;;  %v181_v17 = vld [vmem:[#allocation5 + $0x48] sm:$0xff] }
  0x2b   :  { %454 = vmatpush3.msra.mxu0 %v83_v2  ;;  %486 = vmatprep.subr.mxu1 %v186_v7  ;;  %v76_v16 = vld [vmem:[#allocation2 + $0x30] sm:$0xff]  ;;  %v75_v18 = vld [vmem:[#allocation2 + $0x28] sm:$0xff]  ;;  %v180_v19 = vld [vmem:[#allocation5 + $0x40] sm:$0xff] }
  0x2c   :  { %455 = vmatprep.subr.mxu0 %v82_v3  ;;  %487 = vmatpush3.msra.mxu1 %v186_v7  ;;  %v74_v20 = vld [vmem:[#allocation2 + $0x20] sm:$0xff]  ;;  %v179_v21 = vld [vmem:[#allocation5 + $0x38] sm:$0xff]  ;;  %v178_v23 = vld [vmem:[#allocation5 + $0x30] sm:$0xff] }
  0x2d   :  { %456 = vmatpush3.msra.mxu0 %v82_v3  ;;  %488 = vmatprep.subr.mxu1 %v185_v9  ;;  %v73_v22 = vld [vmem:[#allocation2 + $0x18] sm:$0xff]  ;;  %v72_v24 = vld [vmem:[#allocation2 + $0x10] sm:$0xff]  ;;  %v177_v25 = vld [vmem:[#allocation5 + $0x28] sm:$0xff] }
  0x2e   :  { %457 = vmatprep.subr.mxu0 %v81_v5  ;;  %489 = vmatpush3.msra.mxu1 %v185_v9  ;;  %v71_v26 = vld [vmem:[#allocation2 + $0x8] sm:$0xff]  ;;  %v70_v27 = vld [vmem:[#allocation2] sm:$0xff]  ;;  %v175_v30 = vld [vmem:[#allocation5 + $0x18] sm:$0xff] }
  0x2f   :  { %458 = vmatpush3.msra.mxu0 %v81_v5  ;;  %490 = vmatprep.subr.mxu1 %v184_v11  ;;  %v69_v28 = vld [vmem:[%s731_s0 + $0x8] sm:$0xff]  ;;  %v176_v29 = vld [vmem:[#allocation5 + $0x20] sm:$0xff]  ;;  %v174_v31 = vld [vmem:[#allocation5 + $0x10] sm:$0xff] }
  0x30   :  { %459 = vmatprep.subr.mxu0 %v80_v8  ;;  %491 = vmatpush3.msra.mxu1 %v184_v11  ;;  %v173_v32 = vld [vmem:[#allocation5 + $0x8] sm:$0xff]  ;;  %v172_v33 = vld [vmem:[#allocation5] sm:$0xff]  ;;  %v289_v34 = vld [vmem:[#allocation7 + $0x78] sm:$0xff] }
  0x31   :  { %460 = vmatpush3.msra.mxu0 %v80_v8  ;;  %492 = vmatprep.subr.mxu1 %v183_v13  ;;  %v288_v35 = vld [vmem:[#allocation7 + $0x70] sm:$0xff]  ;;  %v287_v36 = vld [vmem:[#allocation7 + $0x68] sm:$0xff]  ;;  %v286_v37 = vld [vmem:[#allocation7 + $0x60] sm:$0xff] }
  0x32   :  { %461 = vmatprep.subr.mxu0 %v79_v10  ;;  %493 = vmatpush3.msra.mxu1 %v183_v13  ;;  %v285_v38 = vld [vmem:[#allocation7 + $0x58] sm:$0xff]  ;;  %v284_v39 = vld [vmem:[#allocation7 + $0x50] sm:$0xff]  ;;  %v283_v40 = vld [vmem:[#allocation7 + $0x48] sm:$0xff] }
  0x33   :  { %462 = vmatpush3.msra.mxu0 %v79_v10  ;;  %494 = vmatprep.subr.mxu1 %v182_v15  ;;  %v282_v41 = vld [vmem:[#allocation7 + $0x40] sm:$0xff]  ;;  %v281_v42 = vld [vmem:[#allocation7 + $0x38] sm:$0xff]  ;;  %v280_v43 = vld [vmem:[#allocation7 + $0x30] sm:$0xff] }
  0x34   :  { %463 = vmatprep.subr.mxu0 %v78_v12  ;;  %495 = vmatpush3.msra.mxu1 %v182_v15  ;;  %v279_v44 = vld [vmem:[#allocation7 + $0x28] sm:$0xff]  ;;  %v392_v45 = vld [vmem:[%s733_s2] ss:$0 sm:$0xff]  ;;  %v277_v55 = vld [vmem:[#allocation7 + $0x18] sm:$0xff] }
  0x35   :  { %464 = vmatpush3.msra.mxu0 %v78_v12  ;;  %496 = vmatprep.subr.mxu1 %v181_v17  ;;  %v278_v54 = vld [vmem:[#allocation7 + $0x20] sm:$0xff]  ;;  %v276_v56 = vld [vmem:[#allocation7 + $0x10] sm:$0xff]  ;;  %v275_v57 = vld [vmem:[#allocation7 + $0x8] sm:$0xff] }
  0x36   :  { %465 = vmatprep.subr.mxu0 %v77_v14  ;;  %497 = vmatpush3.msra.mxu1 %v181_v17  ;;  %v274_v58 = vld [vmem:[#allocation7] sm:$0xff] }
  0x37   :  { %466 = vmatpush3.msra.mxu0 %v77_v14  ;;  %498 = vmatprep.subr.mxu1 %v180_v19  ;;  %v393_v59 = vld [vmem:[%s735_s4] ss:$0 sm:$0xff]  ;;  %s620_s4 = scalar_lea.vmem %s380_s24, 256 }
  0x38   :  { %467 = vmatprep.subr.mxu0 %v76_v16  ;;  %499 = vmatpush3.msra.mxu1 %v180_v19  ;;  %v394_v4 = vld [vmem:[%s737_s6] ss:$0 sm:$0xff]  ;;  %p621_p1 = scmp.ne.s32.totalorder %s380_s24, %s620_s4  ;;  %p626_p3 = scmp.lt.s32.totalorder %s620_s4, %s620_s4 }
  0x39   :  { %468 = vmatpush3.msra.mxu0 %v76_v16  ;;  %500 = vmatprep.subr.mxu1 %v179_v21 }
  0x3a   :  { %469 = vmatprep.subr.mxu0 %v75_v18  ;;  %501 = vmatpush3.msra.mxu1 %v179_v21  ;;  %p627_p4 = por %p626_p3, %p625_p2 }
  0x3b   :  { %470 = vmatpush3.msra.mxu0 %v75_v18  ;;  %502 = vmatprep.subr.mxu1 %v178_v23 }
  0x3c   :  { %471 = vmatprep.subr.mxu0 %v74_v20  ;;  %503 = vmatpush3.msra.mxu1 %v178_v23  ;;  %p628_p5 = pnand %p627_p4, %p621_p1 }
  0x3d   :  { %472 = vmatpush3.msra.mxu0 %v74_v20  ;;  %504 = vmatprep.subr.mxu1 %v177_v25 }
  0x3e   :  { %473 = vmatprep.subr.mxu0 %v73_v22  ;;  %505 = vmatpush3.msra.mxu1 %v177_v25 }
  0x3f   :  { %474 = vmatpush3.msra.mxu0 %v73_v22  ;;  %506 = vmatprep.subr.mxu1 %v176_v29 }
  0x40   :  { %475 = vmatprep.subr.mxu0 %v72_v24  ;;  %507 = vmatpush3.msra.mxu1 %v176_v29 }
  0x41   :  { %476 = vmatpush3.msra.mxu0 %v72_v24  ;;  %508 = vmatprep.subr.mxu1 %v175_v30 }
  0x42   :  { %477 = vmatprep.subr.mxu0 %v71_v26  ;;  %509 = vmatpush3.msra.mxu1 %v175_v30 }
  0x43   :  { %478 = vmatpush3.msra.mxu0 %v71_v26  ;;  %510 = vmatprep.subr.mxu1 %v174_v31 }
  0x44   :  { %479 = vmatprep.subr.mxu0 %v70_v27  ;;  %511 = vmatpush3.msra.mxu1 %v174_v31 }
  0x45   :  { %480 = vmatpush3.msra.mxu0 %v70_v27  ;;  %512 = vmatprep.subr.mxu1 %v173_v32 }
  0x46   :  { %482 = vmatmul.mubr.f32.vlgmr.msra.gmra.mxu0 %v69_v28  ;;  %513 = vmatpush3.msra.mxu1 %v173_v32 }
  0x47   :  { %514 = vmatprep.subr.mxu1 %v172_v33  ;;  %519 = vmatprep.subr.mxu0 %v289_v34 }
  0x48   :  { %515 = vmatpush3.msra.mxu1 %v172_v33  ;;  %520 = vmatpush3.msra.mxu0 %v289_v34 }
  0x49   :  { %521 = vmatprep.subr.mxu0 %v288_v35 }
  0x4a   :  { %522 = vmatpush3.msra.mxu0 %v288_v35 }
  0x4b   :  { %523 = vmatprep.subr.mxu0 %v287_v36 }
  0x4c   :  { %524 = vmatpush3.msra.mxu0 %v287_v36 }
  0x4d   :  { %525 = vmatprep.subr.mxu0 %v286_v37 }
  0x4e   :  { %526 = vmatpush3.msra.mxu0 %v286_v37 }
  0x4f   :  { %527 = vmatprep.subr.mxu0 %v285_v38 }
  0x50   :  { %528 = vmatpush3.msra.mxu0 %v285_v38 }
  0x51   :  { %529 = vmatprep.subr.mxu0 %v284_v39 }
  0x52   :  { %530 = vmatpush3.msra.mxu0 %v284_v39 }
  0x53   :  { %531 = vmatprep.subr.mxu0 %v283_v40 }
  0x54   :  { %532 = vmatpush3.msra.mxu0 %v283_v40 }
  0x55   :  { %533 = vmatprep.subr.mxu0 %v282_v41 }
  0x56   :  { %534 = vmatpush3.msra.mxu0 %v282_v41 }
  0x57   :  { %535 = vmatprep.subr.mxu0 %v281_v42 }
  0x58   :  { %536 = vmatpush3.msra.mxu0 %v281_v42 }
  0x59   :  { %537 = vmatprep.subr.mxu0 %v280_v43 }
  0x5a   :  { %538 = vmatpush3.msra.mxu0 %v280_v43 }
  0x5b   :  { %539 = vmatprep.subr.mxu0 %v279_v44 }
  0x5c   :  { %540 = vmatpush3.msra.mxu0 %v279_v44 }
  0x5d   :  { %541 = vmatprep.subr.mxu0 %v278_v54 }
  0x5e   :  { %542 = vmatpush3.msra.mxu0 %v278_v54 }
  0x5f   :  { %543 = vmatprep.subr.mxu0 %v277_v55 }
  0x60   :  { %544 = vmatpush3.msra.mxu0 %v277_v55 }
  0x61   :  { %545 = vmatprep.subr.mxu0 %v276_v56 }
  0x62   :  { %546 = vmatpush3.msra.mxu0 %v276_v56 }
  0x63   :  { %547 = vmatprep.subr.mxu0 %v275_v57 }
  0x64   :  { %548 = vmatpush3.msra.mxu0 %v275_v57 }
  0x65   :  { %549 = vmatprep.subr.mxu0 %v274_v58 }
  0x66   :  { %550 = vmatpush3.msra.mxu0 %v274_v58 }
 0x106   :  { %v483_v46 = vpop.f32.mrf.mxu0 }
 0x107   :  { %v165_v47 = vadd.f32 %v483_v46, %v392_v45 }
 0x108   :  { %v159_v48 = vpop.f32.mrf.mxu0 }
 0x109   :  { %v160_v49 = vadd.f32 %v392_v45, %v159_v48  ;;  %v169_v50 = vmax.f32 %v165_v47, 0.0 }
 0x10b   :  { %v168_v51 = vmax.f32 %v160_v49, 0.0  ;;  %v171_v53 = vmin.f32 %v169_v50, 6.0 }
 0x10d   :  { %v170_v52 = vmin.f32 %v168_v51, 6.0 }
 0x10f   :  { %516 = vmatprep.mubr.f32.mxu1 %v170_v52 }
 0x110   :  { %517 = vmatmul.mubr.f32.vlgmr.msra.gmra.mxu1 %v171_v53 }
 0x1d0   :  { %v518_v60 = vpop.f32.mrf.mxu1 }
 0x1d1   :  { %v267_v61 = vadd.f32 %v518_v60, %v393_v59 }
 0x1d2   :  { %v261_v62 = vpop.f32.mrf.mxu1 }
 0x1d3   :  { %v262_v63 = vadd.f32 %v393_v59, %v261_v62  ;;  %v271_v0 = vmax.f32 %v267_v61, 0.0 }
 0x1d5   :  { %v270_v1 = vmax.f32 %v262_v63, 0.0  ;;  %v273_v3 = vmin.f32 %v271_v0, 6.0 }
 0x1d7   :  { %v272_v2 = vmin.f32 %v270_v1, 6.0 }
 0x1d9   :  { %551 = vmatprep.mubr.f32.mxu0 %v272_v2 }
 0x1da   :  { %552 = vmatmul.mubr.f32.vlgmr.msra.gmra.mxu0 %v273_v3 }
 0x29a   :  { %v553_v5 = vpop.f32.mrf.mxu0 }
 0x29b   :  { %v369_v6 = vadd.f32 %v553_v5, %v394_v4 }
 0x29c   :  { %v363_v7 = vpop.f32.mrf.mxu0 }
 0x29d   :  { %373 = vst [vmem:[#allocation8 + $0x8] sm:$0xff] %v369_v6  ;;  %v364_v8 = vadd.f32 %v394_v4, %v363_v7 }
 0x29f   :  { %372 = vst [vmem:[#allocation8] sm:$0xff] %v364_v8 }
 0x2a0   :  { %631 = shalt.err (!%p628_p5)
}
 0x2a1   :  { %385 = dma.vmem_to_hbm [thread:$0]  %s380_s24, 256, %s738_s7, [#allocation4], %s648_s29, %s648_s29, %s649_s30  }
 0x2a2   :  { %644 = dma.done.wait [#allocation4], 256  }
 0x2a3   :  { %645 = vsyncadd [#allocation4], 4294967040 }
 0x2a4   :  { %389 = vsyncpa [#allocation3], 1 }
 0x2a5   :  { %390 = vsyncpa [#allocation6], 1 }
 0x2a6   :  { %391 = vsyncpa [#allocation4], 1 }

</bundles_post_ra>
